<compile_context>
chip_gen: v7x
topology: tpu7x:2x2x1
jax: 0.10.0
libtpu: 0.0.40
codegen_flags: <defaults>
</compile_context>

<pallas_src>
import jax
import jax.numpy as jnp
from jax.experimental import pallas as pl
from jax.experimental.pallas import tpu as pltpu


def _round_up(x, m):
    return (x + m - 1) // m * m


def _pool_contract_kernel(w_ref, p_ref, o_ref):
    # w_ref: (b_blk, P)    pool-mixing weights for this batch tile (tiny)
    # p_ref: (P, d_blk)    one (layer, k/v) lane-dense slice of the prompt pool
    # o_ref: (b_blk, d_blk) lane-dense output tile; float32 MXU accumulation
    o_ref[...] = jnp.dot(
        w_ref[...], p_ref[...], preferred_element_type=jnp.float32
    ).astype(o_ref.dtype)


def einsum_bp_ndplhe(prompt_weight, prompt, *, b_block=None, d_block=None,
                     out_dtype=jnp.float32, vmem_limit_bytes=None,
                     vmem_budget_bytes=24 * 1024 * 1024):
    """Pallas version of torch.einsum('bp,ndplhe->ndblhe', prompt_weight, prompt).

    Returns (num_layers, 2, B, length, num_heads, head_dim) in `out_dtype`.

    Layout strategy:
      * prompt is fed as the free view (ND, P, D); output is (ND, B_pad, D);
        both ends of the kernel are free reshapes — no transposes anywhere.
      * grid = (ND, D-blocks, B-blocks), batch innermost so every prompt tile
        is fetched from HBM exactly once.
      * d_block (if splitting) must be a multiple of 128 that divides D; the
        auto-picker chooses the largest divisor that fits the VMEM budget
        (relevant on v7x with 64 MiB VMEM / 32 MiB scoped default).
    """
    n, dual, P, L, H, E = prompt.shape
    ND = n * dual
    D = L * H * E
    B = prompt_weight.shape[0]

    in_dtype = prompt.dtype
    in_bytes = jnp.dtype(in_dtype).itemsize
    out_bytes = jnp.dtype(out_dtype).itemsize

    # --- batch tiling: full sublanes (multiple of 8), MXU-friendly cap ---
    if b_block is None:
        b_block = min(_round_up(B, 8), 256)
    b_block = max(8, _round_up(b_block, 8))
    B_pad = _round_up(max(B, b_block), b_block)
    grid_b = B_pad // b_block

    # --- D tiling: approx double-buffered per-step footprint ---
    def _footprint(d):
        return 2 * (P * d * in_bytes + b_block * d * out_bytes
                    + b_block * P * in_bytes)

    if d_block is None:
        if _footprint(D) <= vmem_budget_bytes or D % 128 != 0:
            d_block = D
        else:
            d_block = D
            cand = (D // 128) * 128
            while cand >= 128:
                if D % cand == 0 and _footprint(cand) <= vmem_budget_bytes:
                    d_block = cand
                    break
                cand -= 128
    if d_block != D:
        assert d_block % 128 == 0 and D % d_block == 0, (
            "d_block must be a multiple of 128 that divides D")
    grid_d = D // d_block

    # Free view: adjacent dims collapsed, pool axis second, everything else
    # fused lane-dense.  No data movement.
    prompt_mat = prompt.reshape(ND, P, D)

    # Pad + cast the (tiny) weight so MXU operand dtypes match; accumulation
    # stays float32.  bf16 cast quantizes mixing weights to ~3 sig. digits.
    w = prompt_weight.astype(in_dtype)
    if B_pad != B:
        w = jnp.pad(w, ((0, B_pad - B), (0, 0)))

    # Batch innermost -> prompt tile index is constant over the inner loop, so
    # Pallas does not re-DMA it.  All axes are independent ("parallel"); with
    # ND >= 2 grid steps the default double-buffering is useful (no Buffered(1)
    # needed).
    grid = (ND, grid_d, grid_b)

    cp_kwargs = dict(dimension_semantics=("parallel", "parallel", "parallel"))
    if vmem_limit_bytes is not None:
        cp_kwargs["vmem_limit_bytes"] = vmem_limit_bytes

    out_mat = pl.pallas_call(
        _pool_contract_kernel,
        out_shape=jax.ShapeDtypeStruct((ND, B_pad, D), out_dtype),
        grid=grid,
        in_specs=[
            pl.BlockSpec((b_block, P), lambda nd, di, bi: (bi, 0)),
            pl.BlockSpec((pl.Squeezed(), P, d_block),
                         lambda nd, di, bi: (nd, 0, di)),
        ],
        out_specs=pl.BlockSpec((pl.Squeezed(), b_block, d_block),
                               lambda nd, di, bi: (nd, bi, di)),
        compiler_params=pltpu.CompilerParams(**cp_kwargs),
    )(w, prompt_mat)

    # (ND, B_pad, D) -> (n, 2, B, L, H, E): drop padding rows + free reshape.
    return out_mat[:, :B].reshape(n, dual, B, L, H, E)


def eprompt_forward(params, x_embed, prompt_mask=None, prompt_idx=None,
                    prompt_weight=None, prompt_momentum=0.0,
                    b_block=None, d_block=None, out_dtype=jnp.float32,
                    vmem_limit_bytes=None):
    """Mirrors EPrompt.forward for the prefix-tune configuration."""
    assert prompt_mask is not None or prompt_idx is not None or prompt_weight is not None
    prompt = params["prompt"]  # (num_layers, 2, pool_size, length, num_heads, head_dim)
    out = {}

    idx = prompt_idx
    # TODO(synk): batchwise_prompt branch (torch.unique/topk over prompt_idx) not ported;
    # it is data-dependent bookkeeping with no hot compute.
    if prompt_mask is not None:
        idx = prompt_mask
    if idx is not None:
        out["prompt_idx"] = idx

    if prompt_weight is not None:
        # Hot path: fused pool contraction on the MXU (Pallas kernel above).
        raw = einsum_bp_ndplhe(prompt_weight, prompt,
                               b_block=b_block, d_block=d_block,
                               out_dtype=out_dtype,
                               vmem_limit_bytes=vmem_limit_bytes)  # (n, 2, B, L, H, E)
        # NOTE: torch does unsqueeze(3) then a *raw row-major reshape*
        # (n, 2, B, 1, L, H, E) -> (n, B, 2, 1*L, H, E), which interleaves the
        # dual(k/v) and batch axes in memory order.  Keep it raw — do NOT transpose.
        raw = raw[:, :, :, None]
        n, dual, Bb, tk, L, H, E = raw.shape
        batched_prompt = raw.reshape(n, Bb, dual, tk * L, H, E)
    else:
        # TODO(synk): prompt_momentum > 0 momentum-mixing branch not ported.
        raw = jnp.take(prompt, idx, axis=2)            # prompt[:, :, idx] — pure gather (glue)
        n, dual, Bb, tk, L, H, E = raw.shape
        batched_prompt = raw.reshape(n, Bb, dual, tk * L, H, E)

    out["batched_prompt"] = batched_prompt
    return out


def init_eprompt_params(key, num_layers, pool_size, length, num_heads, embed_dim,
                        dtype=jnp.bfloat16):
    assert embed_dim % num_heads == 0
    head_dim = embed_dim // num_heads
    # matches nn.init.uniform_(self.prompt, -1, 1); stored in bf16 by default to
    # halve the dominant HBM read (MXU still accumulates in f32).
    prompt = jax.random.uniform(
        key, (num_layers, 2, pool_size, length, num_heads, head_dim),
        minval=-1.0, maxval=1.0, dtype=jnp.float32).astype(dtype)
    # prompt_key=False branch of __init__ (unused in forward, kept for fidelity)
    prompt_key = jnp.mean(prompt.astype(jnp.float32), axis=(0, 2))
    return {"prompt": prompt, "prompt_key": prompt_key}


def _reference(prompt_weight, prompt_f32):
    # Same einsum + unsqueeze + raw reshape semantics as the torch code.
    raw = jnp.einsum("bp,ndplhe->ndblhe", prompt_weight, prompt_f32)[:, :, :, None]
    n_, d_, b_, tk_, L_, H_, E_ = raw.shape
    return raw.reshape(n_, b_, d_, tk_ * L_, H_, E_)


if __name__ == "__main__":
    # --- config 1: small demo shapes ---
    num_layers, pool_size, length, num_heads, embed_dim = 2, 8, 5, 4, 32
    head_dim = embed_dim // num_heads
    B, seq = 2, 8

    key = jax.random.PRNGKey(0)
    k_prompt, k_x, k_w = jax.random.split(key, 3)

    x_embed = jax.random.normal(k_x, (B, seq, embed_dim), dtype=jnp.float32)
    prompt_weight = jax.nn.softmax(
        jax.random.normal(k_w, (B, pool_size), dtype=jnp.float32), axis=-1)

    # 1) float32 prompt (tight-tolerance correctness check of the kernel).
    params_f32 = init_eprompt_params(k_prompt, num_layers, pool_size, length,
                                     num_heads, embed_dim, dtype=jnp.float32)
    ref_f32 = _reference(prompt_weight, params_f32["prompt"])
    out = eprompt_forward(params_f32, x_embed, prompt_weight=prompt_weight)
    bp = jax.block_until_ready(out["batched_prompt"])
    assert bp.shape == (num_layers, B, 2, length, num_heads, head_dim), bp.shape
    assert jnp.allclose(bp, ref_f32, atol=1e-4), "f32 Pallas result mismatch vs reference"

    # 2) bf16 prompt storage (default): halves the dominant HBM read; f32 MXU accumulate.
    params_bf16 = init_eprompt_params(k_prompt, num_layers, pool_size, length,
                                      num_heads, embed_dim)  # default bf16
    ref_bf16 = _reference(prompt_weight, params_bf16["prompt"].astype(jnp.float32))
    out_bf16 = eprompt_forward(params_bf16, x_embed, prompt_weight=prompt_weight)
    bp_bf16 = jax.block_until_ready(out_bf16["batched_prompt"])
    assert jnp.allclose(bp_bf16, ref_bf16, atol=5e-2), "bf16 Pallas result mismatch vs reference"

    # 3) exercise the D-tiled + padded-batch path (D = 512, d_block = 256, B = 9 -> padded to 16).
    nl2, ps2, len2, nh2, ed2, B2 = 1, 8, 4, 8, 128, 9
    k_p2, k_w2 = jax.random.split(jax.random.PRNGKey(1))
    params2 = init_eprompt_params(k_p2, nl2, ps2, len2, nh2, ed2, dtype=jnp.float32)
    w2 = jax.nn.softmax(jax.random.normal(k_w2, (B2, ps2), dtype=jnp.float32), axis=-1)
    ref2 = _reference(w2, params2["prompt"])
    out2 = eprompt_forward(params2, None, prompt_weight=w2, d_block=256)
    bp2 = jax.block_until_ready(out2["batched_prompt"])
    assert bp2.shape == (nl2, B2, 2, len2, nh2, ed2 // nh2), bp2.shape
    assert jnp.allclose(bp2, ref2, atol=1e-4), "D-tiled Pallas result mismatch vs reference"

    print("KERNEL_OK")
</pallas_src>

<mosaic_0001>
module attributes {stable_mosaic.version = 11 : i64} {
  func.func @_pool_contract_kernel(%arg0: i32, %arg1: i32, %arg2: i32, %arg3: memref<8x8xf32, #tpu.memory_space<vmem>>, %arg4: memref<1x8x160xf32, #tpu.memory_space<vmem>>, %arg5: memref<1x8x160xf32, #tpu.memory_space<vmem>>) attributes {dimension_semantics = [#tpu.dimension_semantics<parallel>, #tpu.dimension_semantics<parallel>, #tpu.dimension_semantics<parallel>], iteration_bounds = array<i64: 4, 1, 1>, scalar_prefetch = 0 : i64, scratch_operands = 0 : i64, tpu.core_type = #tpu.core_type<tc>, window_params = [{transform_indices = @transform_0, window_bounds = array<i64: 8, 8>}, {transform_indices = @transform_1, window_bounds = array<i64: 1, 8, 160>}, {transform_indices = @transform_2, window_bounds = array<i64: 1, 8, 160>}]} {
    %c0 = arith.constant 0 : index
    %c0_0 = arith.constant 0 : index
    %0 = vector.load %arg3[%c0, %c0_0] : memref<8x8xf32, #tpu.memory_space<vmem>>, vector<8x8xf32>
    %c0_1 = arith.constant 0 : index
    %c0_2 = arith.constant 0 : index
    %c0_3 = arith.constant 0 : index
    %1 = vector.load %arg4[%c0_1, %c0_2, %c0_3] : memref<1x8x160xf32, #tpu.memory_space<vmem>>, vector<1x8x160xf32>
    %2 = vector.shape_cast %1 : vector<1x8x160xf32> to vector<8x160xf32>
    %cst = arith.constant dense<0.000000e+00> : vector<8x160xf32>
    %3 = tpu.matmul %0, %2, %cst {dimension_numbers = #tpu.dot_dimension_numbers<[1], [0], [0], [1], [0, 0, 1, 1], [], []>} : vector<8x8xf32>, vector<8x160xf32>, vector<8x160xf32> -> vector<8x160xf32>
    %c0_4 = arith.constant 0 : index
    %c0_5 = arith.constant 0 : index
    %c0_6 = arith.constant 0 : index
    %4 = vector.load %arg5[%c0_4, %c0_5, %c0_6] : memref<1x8x160xf32, #tpu.memory_space<vmem>>, vector<1x8x160xf32>
    %5 = vector.shape_cast %4 : vector<1x8x160xf32> to vector<8x160xf32>
    %6 = vector.shape_cast %3 : vector<8x160xf32> to vector<1x8x160xf32>
    tpu.vector_store %arg5[%c0_4, %c0_5, %c0_6], %6 {strides = array<i32>} : memref<1x8x160xf32, #tpu.memory_space<vmem>>, vector<1x8x160xf32>,
    return
  }
  func.func @transform_0(%arg0: i32, %arg1: i32, %arg2: i32) -> (i32, i32) {
    %c0_i32 = arith.constant 0 : i32
    %c0_i32_0 = arith.constant 0 : i32
    return %arg2, %c0_i32 : i32, i32
  }
  func.func @transform_1(%arg0: i32, %arg1: i32, %arg2: i32) -> (i32, i32, i32) {
    %c0_i32 = arith.constant 0 : i32
    %c0_i32_0 = arith.constant 0 : i32
    return %arg0, %c0_i32, %arg1 : i32, i32, i32
  }
  func.func @transform_2(%arg0: i32, %arg1: i32, %arg2: i32) -> (i32, i32, i32) {
    %c0_i32 = arith.constant 0 : i32
    return %arg0, %arg2, %arg1 : i32, i32, i32
  }
}

</mosaic_0001>

<bundles_post_ra>
// kernel: tpu_custom_call.1
= control target key start
LH: loop header
LB: loop body
LE: loop exit
PB: predicated region body
PF: predicated region fallthrough
CT: control target
= control target key end

     0   :  { %7 = vsyncpa [#allocation3], 0  ;;  %s885_s0 = inlined_call_operand.hbm [shape: f32[8,8], index: 0, kind: input, shape index: {}]   ;;  %s886_s1 = inlined_call_operand.hbm [shape: f32[4,8,160], index: 1, kind: input, shape index: {}]   ;;  %s887_s2 = inlined_call_operand.hbm [shape: f32[4,8,160], index: 2, kind: output, shape index: {}]  }
   0x1   :  { %8 = vsyncpa [#allocation6], 0 }
   0x2   :  { %10 = vsyncpa [#allocation6 + $0x1], 0 }
   0x3   :  { %11 = vsyncpa [#allocation4], 0 }
   0x4   :  { %13 = vsyncpa [#allocation4 + $0x1], 0  ;;  %s671_s9 = smov 0   ;;  %s673_s10 = smov 0  }
   0x5   :  { %s675_s11 = smov 0   ;;  %s677_s12 = smov 0  }
   0x6   :  { %s679_s13 = smov 0   ;;  %s681_s14 = smov 0  }
   0x7 LB: > { %s412_s15 = sadd.s32 4294967295, %s650_s14   ;;  %s413_s16 = sadd.s32 4294967294, %s650_s14   ;;  %s650_s14 = sphi %s681_s14, %s19_s14   ;;  %s646_s13 = sphi %s679_s13, %s911_s13   ;;  %s642_s12 = sphi %s677_s12, %s910_s12   ;;  %s638_s11 = sphi %s675_s11, %s909_s11   ;;  %s634_s10 = sphi %s673_s10, %s908_s10   ;;  %s630_s9 = sphi %s671_s9, %s907_s9  }
   0x8   : > { %p86_p0 = scmp.ne.s32.totalorder %s634_s10, %s630_s9  ;;  %p705_p1 = scmp.eq.s32.totalorder %s412_s15, 0 }
   0x9   : > { %p709_p2 = scmp.eq.s32.totalorder %s412_s15, 3  ;;  %p120_p3 = scmp.eq.s32.totalorder %s413_s16, 3 }
   0xa   : > { %s892_s17 = scalar_select %p705_p1, 1, 0 }
   0xb   : > { %s893_s18 = scalar_select %p709_p2, 1, 0 }
   0xc   : > { %p715_p4 = por %p705_p1, %p86_p0  ;;  %p414_p5 = scmp.ge.s32.totalorder %s650_s14, 1 }
   0xd   : > { %p720_p6 = por %p120_p3, %p86_p0  ;;  %p127_p7 = scmp.lt.s32.totalorder %s650_s14, 5 }
   0xe   : > { %s894_s19 = scalar_select %p715_p4, 1, 0 }
   0xf   : > { %s895_s20 = scalar_select %p720_p6, 1, 0 }
  0x10   : > { %p725_p8 = pnand %p414_p5, %p127_p7  ;;  %s652_s22 = smov [#allocation2]  }
  0x11   : > { %s142_s23 = sshll.u32 %s652_s22, 4  ;;  %s38_s25 = sadd.s32 1, %s646_s13  ;;  %s143_s23 = int_to_ptr.vmem [resolvable:$true] %s142_s23 }
  0x12   : > { %s896_s21 = scalar_select %p725_p8, 1, 0 }
  0x13   : > { %p440_p9 = pneg %p725_p8  ;;  %s73_s26 = sadd.s32 1, %s638_s11 }
  0x14   : > { %p739_p11 = scmp.ge.s32.totalorder %s38_s25, 4  ;;  %s506_s30 = scalar_lea.hbm %s885_s0, 128 }
  0x15   : > { %p733_p10 = pnand %p440_p9, %p705_p1  ;;  %p507_p12 = scmp.ne.s32.totalorder %s885_s0, %s506_s30 }
  0x16   : > { %s898_s27 = scalar_select %p739_p11, 1, 0 }
  0x17   : > { %p508_p13 = pneg %p733_p10  ;;  %p513_p5 = scmp.lt.u32.totalorder %s506_s30, %s885_s0 }
  0x19   : > { %p509_p0 = pnand %p508_p13, %p507_p12 }
  0x1b   : > { %p510_p3 = pneg %p509_p0 }
  0x1d   : > { %p515_p7 = pnand %p513_p5, %p510_p3 }
  0x1f   : > { %518 = shalt.err (!%p515_p7)
}
  0x20   : > { %s519_s7 = scalar_lea.vmem %s143_s23, 128  ;;  %p527_p1 = scmp.lt.s32.totalorder %s143_s23, %s143_s23 }
  0x21   : > { %p520_p9 = scmp.ne.s32.totalorder %s143_s23, %s519_s7  ;;  %p528_p8 = scmp.lt.s32.totalorder %s519_s7, %s519_s7 }
  0x23   : > { %p522_p6 = pnand %p520_p9, %p508_p13  ;;  %p529_p2 = por %p528_p8, %p527_p1 }
  0x25   : > { %p523_p4 = pneg %p522_p6 }
  0x27   : > { %p530_p11 = pnand %p529_p2, %p523_p4 }
  0x29   : > { %533 = shalt.err (!%p530_p11)
}
  0x2a   : > { %443 = dma.hbm_to_vmem [thread:$0]  (!%p733_p10), %s885_s0, 128, %s143_s23, [#allocation3]  }
  0x2b   : > { %p899_p1 = scmp.ne.s32.totalorder %s898_s27, 0  ;;  %p80_p2 = scmp.ne.s32.totalorder %s638_s11, %s634_s10 }
  0x2c   : > { %p81_p4 = scmp.eq.s32.totalorder %s650_s14, 0  ;;  %p453_p6 = scmp.lt.s32.totalorder %s650_s14, 4 }
  0x2d   : > { %s913_s25 = smov (%p899_p1, %s38_s25), 0  ;;  %p900_p12 = scmp.ne.s32.totalorder %s893_s18, 0 }
  0x2e   : > { %s68_s16 = ssub.s32 %s646_s13, %s913_s25  ;;  %p82_p11 = por %p81_p4, %p80_p2 }
  0x2f   : > { %p71_p8 = scmp.eq.s32.totalorder %s68_s16, 0  ;;  %p771_p13 = por %p900_p12, %p80_p2 }
  0x30   : > { %s153_s24 = sand.u32 1, %s638_s11   ;;  %s430_s27 = sshll.u32 %s646_s13, 8 }
  0x31   : > { %s779_s28 = scalar_select %p71_p8, %s638_s11, %s73_s26  }
  0x32   : > { %s417_s23 = sshll.u32 %s153_s24, 4  ;;  %s785_s3 = scalar_lea.hbm %s886_s1, %s430_s27 }
  0x33   : > { %s157_s18 = scalar_lea.vmem [#allocation5], %s417_s23  ;;  %p789_p10 = pnand %p453_p6, %p82_p11 }
  0x34   : > { %s167_s4 = sshll.u32 %s157_s18, 4  ;;  %s154_s26 = scalar_lea.sflag [#allocation6], %s153_s24  ;;  %s787_s4 = int_to_ptr.vmem [resolvable:$true] %s167_s4 }
  0x35   : > { %s534_s6 = scalar_lea.hbm %s785_s3, 256  ;;  %p536_p3 = pneg %p789_p10 }
  0x36   : > { %p535_p0 = scmp.ne.s32.totalorder %s785_s3, %s534_s6  ;;  %s539_s15 = scalar_lea.hbm %s886_s1, 1024 }
  0x37   : > { %p540_p9 = scmp.lt.u32.totalorder %s785_s3, %s886_s1  ;;  %p541_p1 = scmp.lt.u32.totalorder %s539_s15, %s534_s6 }
  0x38   : > { %p537_p5 = pnand %p536_p3, %p535_p0  ;;  %p543_p4 = scmp.lt.u32.totalorder %s534_s6, %s785_s3 }
  0x39   : > { %p542_p2 = por %p541_p1, %p540_p9 }
  0x3a   : > { %p538_p7 = pneg %p537_p5 }
  0x3b   : > { %p544_p6 = por %p543_p4, %p542_p2 }
  0x3d   : > { %p545_p8 = pnand %p544_p6, %p538_p7 }
  0x3f   : > { %548 = shalt.err (!%p545_p8)
}
  0x40   : > { %s549_s24 = scalar_lea.vmem %s787_s4, 256  ;;  %s653_s27 = smov [#allocation5]  }
  0x41   : > { %p550_p11 = scmp.ne.s32.totalorder %s787_s4, %s549_s24  ;;  %s554_s29 = sshll.u32 %s653_s27, 4  ;;  %s555_s29 = int_to_ptr.vmem [resolvable:$false] %s554_s29 }
  0x42   : > { %s556_s30 = scalar_lea.vmem %s555_s29, 512  ;;  %p557_p5 = scmp.lt.s32.totalorder %s787_s4, %s555_s29 }
  0x43   : > { %p552_p12 = pnand %p550_p11, %p536_p3  ;;  %p558_p9 = scmp.lt.s32.totalorder %s556_s30, %s549_s24 }
  0x45   : > { %p553_p0 = pneg %p552_p12  ;;  %p559_p1 = por %p558_p9, %p557_p5 }
  0x47   : > { %p560_p2 = pnand %p559_p1, %p553_p0 }
  0x49   : > { %563 = shalt.err (!%p560_p2)
}
  0x4a   : > { %447 = dma.hbm_to_vmem [thread:$0]  (!%p789_p10), %s785_s3, 256, %s787_s4, %s154_s26  }
  0x4b   : > { %p903_p7 = scmp.ne.s32.totalorder %s896_s21, 0 }
  0x4c   : > { %p904_p3 = scmp.ne.s32.totalorder (!%p903_p7), %s892_s17, 0 }
  0x4d   : > { %176 = sbr.rel (%p903_p7) target bundleno = 319 (0x13f), region = 28 }
  0x54   : > { %617 = dma.done.wait (%p904_p3), [#allocation3], 128  }
  0x55   : > { %619 = vsyncadd (%p904_p3), [#allocation3], 4294967168  ;;  %s825_s18 = sand.u32 1, %s634_s10   ;;  %p905_p4 = scmp.ne.s32.totalorder %s894_s19, 0 }
  0x56   : > { %s422_s6 = sshll.u32 %s825_s18, 4  ;;  %s183_s5 = scalar_lea.sflag [#allocation6], %s825_s18 }
  0x57   : > { %s186_s7 = scalar_lea.vmem [#allocation5], %s422_s6 }
  0x58   : > { %621 = dma.done.wait (%p905_p4), %s183_s5, 256  }
  0x59   : > { %623 = vsyncadd (%p905_p4), %s183_s5, 4294967040  ;;  %v654_v0 = vmov 0.0   ;;  %v211_v1 = vld [vmem:[%s186_s7 + $0x8] sm:$0xff]  ;;  %v210_v2 = vld [vmem:[%s186_s7] sm:$0xff]  ;;  %vm212_vm0 = vcmask 64512   ;;  %s206_s17 = scalar_lea.vmem [#allocation7], %s422_s6 }
  0x5a   : > { %280 = vmatprep.mubr.f32.mxu0 %v654_v0  ;;  %v209_v3 = vld [vmem:[#allocation2] sm:$0xff]  ;;  %216 = vmatprep.subr.mxu0 %v211_v1  ;;  %s309_s21 = sshll.u32 %s206_s17, 4  ;;  %s431_s3 = sshll.u32 %s642_s12, 8  ;;  %vm288_vm1 = vcmask 261120   ;;  %s834_s21 = int_to_ptr.vmem [resolvable:$true] %s309_s21 }
  0x5b   : > { %217 = vmatpush1.msra.mxu0 %v210_v2  ;;  %s839_s26 = scalar_lea.hbm %s887_s2, %s431_s3  ;;  %s291_s8 = scalar_lea.sflag [#allocation4], %s825_s18 }
  0x5c   : > { %424 = vmatmul.mubr.msk.f32.vlgmr.msra.gmra.mrb[0].mxu0 %vm212_vm0, %v209_v3  ;;  %s564_s15 = scalar_lea.vmem %s834_s21, 256  ;;  %s655_s12 = smov [#allocation7]  }
  0x5d   : > { %p565_p10 = scmp.ne.s32.totalorder %s834_s21, %s564_s15  ;;  %s568_s16 = sshll.u32 %s655_s12, 4  ;;  %s569_s16 = int_to_ptr.vmem [resolvable:$false] %s568_s16 }
  0x5e   : > { %s570_s23 = scalar_lea.vmem %s569_s16, 512  ;;  %p571_p11 = scmp.lt.s32.totalorder %s834_s21, %s569_s16 }
  0x5f   : > { %p566_p6 = pnand %p565_p10, %p771_p13  ;;  %p572_p12 = scmp.lt.s32.totalorder %s570_s23, %s564_s15 }
  0x61   : > { %p567_p8 = pneg %p566_p6  ;;  %p573_p0 = por %p572_p12, %p571_p11 }
  0x63   : > { %p574_p5 = pnand %p573_p0, %p567_p8 }
 0x12f   : > { %v282_v4 = vpop.f32.mrb[0].mxu0 }
 0x130   : > { %287 = vst [vmem:[%s206_s17] sm:$0xff] %v282_v4  ;;  %v284_v5 = vpop.f32.mrb[1].mxu0 }
 0x131   : > { %289 = vst.msk [vmem:[%s206_s17 + $0x8] sm:$0xff] %vm288_vm1, %v284_v5 }
 0x132   : > { %577 = shalt.err (!%p574_p5)
}
 0x133   : > { %s578_s24 = scalar_lea.hbm %s839_s26, 256  ;;  %s582_s30 = scalar_lea.hbm %s887_s2, 1024 }
 0x134   : > { %p579_p9 = scmp.ne.s32.totalorder %s839_s26, %s578_s24  ;;  %p583_p7 = scmp.lt.u32.totalorder %s839_s26, %s887_s2 }
 0x135   : > { %p584_p3 = scmp.lt.u32.totalorder %s582_s30, %s578_s24  ;;  %p586_p10 = scmp.lt.u32.totalorder %s578_s24, %s839_s26 }
 0x136   : > { %p580_p1 = pnand %p579_p9, %p771_p13 }
 0x137   : > { %p585_p4 = por %p584_p3, %p583_p7 }
 0x138   : > { %p581_p2 = pneg %p580_p1 }
 0x139   : > { %p587_p6 = por %p586_p10, %p585_p4 }
 0x13b   : > { %p588_p8 = pnand %p587_p6, %p581_p2 }
 0x13d   : > { %591 = shalt.err (!%p588_p8)
}
 0x13e   : > { %438 = dma.vmem_to_hbm [thread:$0]  (%p771_p13), %s834_s21, 256, %s839_s26, %s291_s8  }
 0x13f PF: > { %p455_p11 = scmp.ge.s32.totalorder %s650_s14, 2  ;;  %s321_s5 = sand.u32 1, %s630_s9  }
 0x140   : > { %p906_p12 = scmp.ne.s32.totalorder %s895_s20, 0  ;;  %s322_s7 = scalar_lea.sflag [#allocation4], %s321_s5 }
 0x142   : > { %p449_p0 = pnand %p455_p11, %p906_p12 }
 0x144   : > { %625 = dma.done.wait (!%p449_p0), %s322_s7, 256  }
 0x145   : > { %627 = vsyncadd (!%p449_p0), %s322_s7, 4294967040  ;;  %s19_s14 = sadd.s32 1, %s650_s14   ;;  %s907_s9 = smov %s634_s10 }
 0x146   : > { %p16_p5 = scmp.ge.s32.totalorder %s19_s14, 6   ;;  %s908_s10 = smov %s638_s11 }
 0x147   : > { %s909_s11 = smov %s779_s28  ;;  %s910_s12 = smov %s646_s13 }
 0x148   : > { %s911_s13 = smov %s913_s25  ;;  %18 = sbr.rel (!%p16_p5) target bundleno = 7 (0x7), region = 79 }
 0x14f   :  { %327 = vsyncpa [#allocation3], 1 }
 0x150   :  { %329 = vsyncpa [#allocation3 + $0x1], 1 }
 0x151   :  { %330 = vsyncpa [#allocation6], 1 }
 0x152   :  { %332 = vsyncpa [#allocation6 + $0x1], 1 }
 0x153   :  { %333 = vsyncpa [#allocation4], 1 }
 0x154   :  { %335 = vsyncpa [#allocation4 + $0x1], 1 }

</bundles_post_ra>
